<compile_context>
chip_gen: v7x
topology: tpu7x:2x2x1
jax: 0.10.0
libtpu: 0.0.40
codegen_flags: <defaults>
</compile_context>

<pallas_src>
import jax
import jax.numpy as jnp
from jax.experimental import pallas as pl
from jax.experimental.pallas import tpu as pltpu


def _round_up(x: int, m: int) -> int:
    return (x + m - 1) // m * m


def mlp_kernel(x_ref, w1_ref, b1_ref, w2_ref, b2_ref, o_ref):
    # Two MXU matmuls (bf16 operands, f32 accumulation) + f32 VPU bias/ReLU.
    x = x_ref[...].astype(w1_ref.dtype)                               # (TB, IN) bf16
    h = jnp.dot(x, w1_ref[...], preferred_element_type=jnp.float32)   # (TB, HIDp) f32
    h = jnp.maximum(h + b1_ref[...], 0.0)                             # bias + ReLU
    y = jnp.dot(h.astype(w2_ref.dtype), w2_ref[...],                  # (TB, OUT) f32
                preferred_element_type=jnp.float32) + b2_ref[...]
    o_ref[...] = y.astype(o_ref.dtype)


def prepare_params(w1, b1, w2, b2):
    """One-time preprocessing (hoisted out of the per-call path).

    Pads the hidden dim to a multiple of 128 (lane-dense MXU operands) and
    casts weights to bf16. Padded hidden columns have zero weight + zero bias,
    so relu keeps them exactly 0 and the zero rows of w2 contribute nothing.
    Call once and reuse the returned tuple for every forward call.
    """
    in_f, hid = w1.shape
    out_f = w2.shape[1]
    hid_p = _round_up(hid, 128)

    w1p = jnp.zeros((in_f, hid_p), jnp.bfloat16).at[:, :hid].set(
        w1.astype(jnp.bfloat16))
    b1p = jnp.zeros((1, hid_p), jnp.float32).at[:, :hid].set(
        b1.reshape(1, -1).astype(jnp.float32))
    w2p = jnp.zeros((hid_p, out_f), jnp.bfloat16).at[:hid, :].set(
        w2.astype(jnp.bfloat16))
    b2p = b2.reshape(1, -1).astype(jnp.float32)
    return (w1p, b1p, w2p, b2p)


def my_sequential_forward(x, params, *, tile_b_max: int = 512):
    """Fused Linear -> ReLU -> Linear forward (params from prepare_params)."""
    w1p, b1p, w2p, b2p = params
    batch, in_f = x.shape
    assert w1p.shape[0] == in_f, "x feature dim does not match w1"
    hid_p = w1p.shape[1]
    out_f = w2p.shape[1]
    out_dtype = x.dtype

    # Batch tiling: large tiles for MXU occupancy / per-step overhead, but at
    # least 2 grid steps whenever batch > 8 so the "parallel" batch axis can be
    # sharded across v7x's two TensorCores (no-op on single-TC v5e/v6e).
    if batch <= 8:
        tb = 8
    else:
        tb = max(8, min(tile_b_max, _round_up((batch + 1) // 2, 8)))
    b_p = _round_up(batch, tb)
    n_tiles = b_p // tb

    # Only the batch dim is ever padded (and only when it doesn't divide the
    # tile). No per-call feature padding / extra copy pass over x.
    xp = x if b_p == batch else jnp.zeros((b_p, in_f), x.dtype).at[:batch].set(x)

    # Generation-aware VMEM budget.
    try:
        phys = int(getattr(pltpu.get_tpu_info(), "vmem_capacity_bytes", 64 << 20))
    except Exception:
        phys = 64 << 20  # conservative fallback (v7x per-TC)
    vmem_cap = max(16 << 20, int(phys * 0.8))

    def vmem_need(weight_bufs: int) -> int:
        return (
            2 * tb * in_f * x.dtype.itemsize            # x tile, double buffered
            + 2 * tb * out_f * out_dtype.itemsize       # out tile, double buffered
            + weight_bufs * ((in_f * hid_p + hid_p * out_f) * 2   # bf16 weights
                             + (hid_p + out_f) * 4)               # f32 biases
            + tb * (in_f * 2 + hid_p * 4 + hid_p * 2 + out_f * 4)  # in-kernel temps
            + (4 << 20)                                 # slack for compiler temporaries
        )

    cost = pl.CostEstimate(
        flops=2 * b_p * (in_f * hid_p + hid_p * out_f),
        transcendentals=0,
        bytes_accessed=(b_p * in_f * x.dtype.itemsize
                        + (in_f * hid_p + hid_p * out_f) * 2
                        + (hid_p + out_f) * 4
                        + b_p * out_f * out_dtype.itemsize),
    )

    def run(single_buffer_weights: bool):
        def const_spec(shape):
            # Weights/biases have a constant index_map (resident across the
            # grid); a single buffer halves their VMEM footprint.
            if single_buffer_weights:
                return pl.BlockSpec(shape, lambda i: (0, 0),
                                    pipeline_mode=pl.Buffered(1))
            return pl.BlockSpec(shape, lambda i: (0, 0))

        vmem_limit = int(min(max(vmem_need(1 if single_buffer_weights else 2),
                                 4 << 20), vmem_cap))

        return pl.pallas_call(
            mlp_kernel,
            out_shape=jax.ShapeDtypeStruct((b_p, out_f), out_dtype),
            grid_spec=pltpu.PrefetchScalarGridSpec(
                num_scalar_prefetch=0,
                grid=(n_tiles,),
                in_specs=[
                    pl.BlockSpec((tb, in_f), lambda i: (i, 0)),   # x: tiled over batch
                    const_spec((in_f, hid_p)),                    # w1: resident
                    const_spec((1, hid_p)),                       # b1: resident
                    const_spec((hid_p, out_f)),                   # w2: resident
                    const_spec((1, out_f)),                       # b2: resident
                ],
                out_specs=pl.BlockSpec((tb, out_f), lambda i: (i, 0)),
            ),
            compiler_params=pltpu.CompilerParams(
                dimension_semantics=("parallel",),   # shard batch tiles across TCs (v7x)
                vmem_limit_bytes=vmem_limit,
            ),
            cost_estimate=cost,
        )(xp, w1p, b1p, w2p, b2p)

    try:
        out = run(single_buffer_weights=True)
        jax.block_until_ready(out)
    except Exception:
        # pipeline_mode=pl.Buffered(1) not supported on this jax build/backend:
        # fall back to default (double-buffered) resident weights.
        out = run(single_buffer_weights=False)

    return out if b_p == batch else out[:batch]


if __name__ == "__main__":
    key = jax.random.PRNGKey(0)
    k_x, k_w1, k_b1, k_w2, k_b2 = jax.random.split(key, 5)

    batch, in_f, hidden, out_f = 8, 32, 64, 16

    x = jax.random.normal(k_x, (batch, in_f), dtype=jnp.float32)
    # torch.nn.Linear-shaped parameters, stored already-transposed as [in, out].
    w1 = jax.random.normal(k_w1, (in_f, hidden), dtype=jnp.float32) * 0.05
    b1 = jax.random.normal(k_b1, (hidden,), dtype=jnp.float32) * 0.05
    w2 = jax.random.normal(k_w2, (hidden, out_f), dtype=jnp.float32) * 0.05
    b2 = jax.random.normal(k_b2, (out_f,), dtype=jnp.float32) * 0.05

    params = prepare_params(w1, b1, w2, b2)   # one-time cost, hoisted out of forward
    out = my_sequential_forward(x, params)
    jax.block_until_ready(out)

    # Pure-JAX f32 reference of the same sequential forward (kernel uses bf16
    # MXU operands with f32 accumulation -> tolerance covers bf16 quantization).
    ref = jnp.maximum(x @ w1 + b1[None, :], 0.0) @ w2 + b2[None, :]
    assert out.shape == ref.shape, "shape mismatch vs reference"
    assert out.dtype == ref.dtype, "dtype mismatch vs reference"
    assert jnp.allclose(out, ref, atol=3e-2, rtol=3e-2), "mismatch vs reference"

    print("KERNEL_OK")
</pallas_src>

<mosaic_0001>
module attributes {stable_mosaic.version = 11 : i64} {
  func.func @mlp_kernel(%arg0: i32, %arg1: memref<8x32xf32, #tpu.memory_space<vmem>>, %arg2: memref<32x128xbf16, #tpu.memory_space<vmem>>, %arg3: memref<1x128xf32, #tpu.memory_space<vmem>>, %arg4: memref<128x16xbf16, #tpu.memory_space<vmem>>, %arg5: memref<1x16xf32, #tpu.memory_space<vmem>>, %arg6: memref<8x16xf32, #tpu.memory_space<vmem>>) attributes {dimension_semantics = [#tpu.dimension_semantics<parallel>], iteration_bounds = array<i64: 1>, scalar_prefetch = 0 : i64, scratch_operands = 0 : i64, tpu.core_type = #tpu.core_type<tc>, window_params = [{transform_indices = @transform_0, window_bounds = array<i64: 8, 32>}, {pipeline_mode = #tpu.pipeline_mode<synchronous>, transform_indices = @transform_1, window_bounds = array<i64: 32, 128>}, {pipeline_mode = #tpu.pipeline_mode<synchronous>, transform_indices = @transform_2, window_bounds = array<i64: 1, 128>}, {pipeline_mode = #tpu.pipeline_mode<synchronous>, transform_indices = @transform_3, window_bounds = array<i64: 128, 16>}, {pipeline_mode = #tpu.pipeline_mode<synchronous>, transform_indices = @transform_4, window_bounds = array<i64: 1, 16>}, {transform_indices = @transform_5, window_bounds = array<i64: 8, 16>}]} {
    %c0 = arith.constant 0 : index
    %c0_0 = arith.constant 0 : index
    %0 = vector.load %arg1[%c0, %c0_0] : memref<8x32xf32, #tpu.memory_space<vmem>>, vector<8x32xf32>
    %1 = arith.truncf %0 : vector<8x32xf32> to vector<8x32xbf16>
    %c0_1 = arith.constant 0 : index
    %c0_2 = arith.constant 0 : index
    %2 = vector.load %arg2[%c0_1, %c0_2] : memref<32x128xbf16, #tpu.memory_space<vmem>>, vector<32x128xbf16>
    %cst = arith.constant dense<0.000000e+00> : vector<8x128xf32>
    %3 = tpu.matmul %1, %2, %cst {dimension_numbers = #tpu.dot_dimension_numbers<[1], [0], [0], [1], [0, 0, 1, 1], [], []>} : vector<8x32xbf16>, vector<32x128xbf16>, vector<8x128xf32> -> vector<8x128xf32>
    %c0_3 = arith.constant 0 : index
    %c0_4 = arith.constant 0 : index
    %4 = vector.load %arg3[%c0_3, %c0_4] : memref<1x128xf32, #tpu.memory_space<vmem>>, vector<1x128xf32>
    %5 = vector.broadcast %4 : vector<1x128xf32> to vector<8x128xf32>
    %6 = arith.addf %3, %5 : vector<8x128xf32>
    %cst_5 = arith.constant 0.000000e+00 : f32
    %7 = vector.broadcast %cst_5 : f32 to vector<8x128xf32>
    %8 = arith.maximumf %6, %7 : vector<8x128xf32>
    %9 = arith.truncf %8 : vector<8x128xf32> to vector<8x128xbf16>
    %c0_6 = arith.constant 0 : index
    %c0_7 = arith.constant 0 : index
    %10 = vector.load %arg4[%c0_6, %c0_7] : memref<128x16xbf16, #tpu.memory_space<vmem>>, vector<128x16xbf16>
    %cst_8 = arith.constant dense<0.000000e+00> : vector<8x16xf32>
    %11 = tpu.matmul %9, %10, %cst_8 {dimension_numbers = #tpu.dot_dimension_numbers<[1], [0], [0], [1], [0, 0, 1, 1], [], []>} : vector<8x128xbf16>, vector<128x16xbf16>, vector<8x16xf32> -> vector<8x16xf32>
    %c0_9 = arith.constant 0 : index
    %c0_10 = arith.constant 0 : index
    %12 = vector.load %arg5[%c0_9, %c0_10] : memref<1x16xf32, #tpu.memory_space<vmem>>, vector<1x16xf32>
    %13 = vector.broadcast %12 : vector<1x16xf32> to vector<8x16xf32>
    %14 = arith.addf %11, %13 : vector<8x16xf32>
    %c0_11 = arith.constant 0 : index
    %c0_12 = arith.constant 0 : index
    %15 = vector.load %arg6[%c0_11, %c0_12] : memref<8x16xf32, #tpu.memory_space<vmem>>, vector<8x16xf32>
    tpu.vector_store %arg6[%c0_11, %c0_12], %14 {strides = array<i32>} : memref<8x16xf32, #tpu.memory_space<vmem>>, vector<8x16xf32>,
    return
  }
  func.func @transform_0(%arg0: i32) -> (i32, i32) {
    %c0_i32 = arith.constant 0 : i32
    %c0_i32_0 = arith.constant 0 : i32
    return %arg0, %c0_i32 : i32, i32
  }
  func.func @transform_1(%arg0: i32) -> (i32, i32) {
    %c0_i32 = arith.constant 0 : i32
    %c0_i32_0 = arith.constant 0 : i32
    %c0_i32_1 = arith.constant 0 : i32
    return %c0_i32, %c0_i32_0 : i32, i32
  }
  func.func @transform_2(%arg0: i32) -> (i32, i32) {
    %c0_i32 = arith.constant 0 : i32
    %c0_i32_0 = arith.constant 0 : i32
    %c0_i32_1 = arith.constant 0 : i32
    return %c0_i32, %c0_i32_0 : i32, i32
  }
  func.func @transform_3(%arg0: i32) -> (i32, i32) {
    %c0_i32 = arith.constant 0 : i32
    %c0_i32_0 = arith.constant 0 : i32
    %c0_i32_1 = arith.constant 0 : i32
    return %c0_i32, %c0_i32_0 : i32, i32
  }
  func.func @transform_4(%arg0: i32) -> (i32, i32) {
    %c0_i32 = arith.constant 0 : i32
    %c0_i32_0 = arith.constant 0 : i32
    %c0_i32_1 = arith.constant 0 : i32
    return %c0_i32, %c0_i32_0 : i32, i32
  }
  func.func @transform_5(%arg0: i32) -> (i32, i32) {
    %c0_i32 = arith.constant 0 : i32
    %c0_i32_0 = arith.constant 0 : i32
    return %arg0, %c0_i32 : i32, i32
  }
}

module attributes {stable_mosaic.version = 11 : i64} {
  func.func @mlp_kernel(%arg0: i32, %arg1: memref<8x32xf32, #tpu.memory_space<vmem>>, %arg2: memref<32x128xbf16, #tpu.memory_space<vmem>>, %arg3: memref<1x128xf32, #tpu.memory_space<vmem>>, %arg4: memref<128x16xbf16, #tpu.memory_space<vmem>>, %arg5: memref<1x16xf32, #tpu.memory_space<vmem>>, %arg6: memref<8x16xf32, #tpu.memory_space<vmem>>) attributes {dimension_semantics = [#tpu.dimension_semantics<parallel>], iteration_bounds = array<i64: 1>, scalar_prefetch = 0 : i64, scratch_operands = 0 : i64, tpu.core_type = #tpu.core_type<tc>, window_params = [{transform_indices = @transform_0, window_bounds = array<i64: 8, 32>}, {pipeline_mode = #tpu.pipeline_mode<synchronous>, transform_indices = @transform_1, window_bounds = array<i64: 32, 128>}, {pipeline_mode = #tpu.pipeline_mode<synchronous>, transform_indices = @transform_2, window_bounds = array<i64: 1, 128>}, {pipeline_mode = #tpu.pipeline_mode<synchronous>, transform_indices = @transform_3, window_bounds = array<i64: 128, 16>}, {pipeline_mode = #tpu.pipeline_mode<synchronous>, transform_indices = @transform_4, window_bounds = array<i64: 1, 16>}, {transform_indices = @transform_5, window_bounds = array<i64: 8, 16>}]} {
    %c0 = arith.constant 0 : index
    %c0_0 = arith.constant 0 : index
    %0 = vector.load %arg1[%c0, %c0_0] : memref<8x32xf32, #tpu.memory_space<vmem>>, vector<8x32xf32>
    %1 = arith.truncf %0 : vector<8x32xf32> to vector<8x32xbf16>
    %c0_1 = arith.constant 0 : index
    %c0_2 = arith.constant 0 : index
    %2 = vector.load %arg2[%c0_1, %c0_2] : memref<32x128xbf16, #tpu.memory_space<vmem>>, vector<32x128xbf16>
    %cst = arith.constant dense<0.000000e+00> : vector<8x128xf32>
    %3 = tpu.matmul %1, %2, %cst {dimension_numbers = #tpu.dot_dimension_numbers<[1], [0], [0], [1], [0, 0, 1, 1], [], []>} : vector<8x32xbf16>, vector<32x128xbf16>, vector<8x128xf32> -> vector<8x128xf32>
    %c0_3 = arith.constant 0 : index
    %c0_4 = arith.constant 0 : index
    %4 = vector.load %arg3[%c0_3, %c0_4] : memref<1x128xf32, #tpu.memory_space<vmem>>, vector<1x128xf32>
    %5 = vector.broadcast %4 : vector<1x128xf32> to vector<8x128xf32>
    %6 = arith.addf %3, %5 : vector<8x128xf32>
    %cst_5 = arith.constant 0.000000e+00 : f32
    %7 = vector.broadcast %cst_5 : f32 to vector<8x128xf32>
    %8 = arith.maximumf %6, %7 : vector<8x128xf32>
    %9 = arith.truncf %8 : vector<8x128xf32> to vector<8x128xbf16>
    %c0_6 = arith.constant 0 : index
    %c0_7 = arith.constant 0 : index
    %10 = vector.load %arg4[%c0_6, %c0_7] : memref<128x16xbf16, #tpu.memory_space<vmem>>, vector<128x16xbf16>
    %cst_8 = arith.constant dense<0.000000e+00> : vector<8x16xf32>
    %11 = tpu.matmul %9, %10, %cst_8 {dimension_numbers = #tpu.dot_dimension_numbers<[1], [0], [0], [1], [0, 0, 1, 1], [], []>} : vector<8x128xbf16>, vector<128x16xbf16>, vector<8x16xf32> -> vector<8x16xf32>
    %c0_9 = arith.constant 0 : index
    %c0_10 = arith.constant 0 : index
    %12 = vector.load %arg5[%c0_9, %c0_10] : memref<1x16xf32, #tpu.memory_space<vmem>>, vector<1x16xf32>
    %13 = vector.broadcast %12 : vector<1x16xf32> to vector<8x16xf32>
    %14 = arith.addf %11, %13 : vector<8x16xf32>
    %c0_11 = arith.constant 0 : index
    %c0_12 = arith.constant 0 : index
    %15 = vector.load %arg6[%c0_11, %c0_12] : memref<8x16xf32, #tpu.memory_space<vmem>>, vector<8x16xf32>
    tpu.vector_store %arg6[%c0_11, %c0_12], %14 {strides = array<i32>} : memref<8x16xf32, #tpu.memory_space<vmem>>, vector<8x16xf32>,
    return
  }
  func.func @transform_0(%arg0: i32) -> (i32, i32) {
    %c0_i32 = arith.constant 0 : i32
    %c0_i32_0 = arith.constant 0 : i32
    return %arg0, %c0_i32 : i32, i32
  }
  func.func @transform_1(%arg0: i32) -> (i32, i32) {
    %c0_i32 = arith.constant 0 : i32
    %c0_i32_0 = arith.constant 0 : i32
    %c0_i32_1 = arith.constant 0 : i32
    return %c0_i32, %c0_i32_0 : i32, i32
  }
  func.func @transform_2(%arg0: i32) -> (i32, i32) {
    %c0_i32 = arith.constant 0 : i32
    %c0_i32_0 = arith.constant 0 : i32
    %c0_i32_1 = arith.constant 0 : i32
    return %c0_i32, %c0_i32_0 : i32, i32
  }
  func.func @transform_3(%arg0: i32) -> (i32, i32) {
    %c0_i32 = arith.constant 0 : i32
    %c0_i32_0 = arith.constant 0 : i32
    %c0_i32_1 = arith.constant 0 : i32
    return %c0_i32, %c0_i32_0 : i32, i32
  }
  func.func @transform_4(%arg0: i32) -> (i32, i32) {
    %c0_i32 = arith.constant 0 : i32
    %c0_i32_0 = arith.constant 0 : i32
    %c0_i32_1 = arith.constant 0 : i32
    return %c0_i32, %c0_i32_0 : i32, i32
  }
  func.func @transform_5(%arg0: i32) -> (i32, i32) {
    %c0_i32 = arith.constant 0 : i32
    %c0_i32_0 = arith.constant 0 : i32
    return %arg0, %c0_i32 : i32, i32
  }
}

</mosaic_0001>

<bundles_post_ra>
// kernel: tpu_custom_call.1
= control target key start
LH: loop header
LB: loop body
LE: loop exit
PB: predicated region body
PF: predicated region fallthrough
CT: control target
= control target key end

     0   :  { %v310_v1 = vmov 0.0   ;;  %vm311_vm0 = vmmov 0   ;;  %vm47_vm1 = vcmask 261120   ;;  %s394_s0 = inlined_call_operand.vmem [shape: f32[8,32], index: 0, kind: input, shape index: {}]   ;;  %s395_s1 = inlined_call_operand.vmem [shape: bf16[32,128], index: 1, kind: input, shape index: {}]   ;;  %s396_s2 = inlined_call_operand.vmem [shape: f32[1,128], index: 2, kind: input, shape index: {}]   ;;  %s397_s3 = inlined_call_operand.vmem [shape: bf16[128,16], index: 3, kind: input, shape index: {}]   ;;  %s398_s4 = inlined_call_operand.vmem [shape: f32[1,16], index: 4, kind: input, shape index: {}]   ;;  %s399_s5 = inlined_call_operand.hbm [shape: f32[8,16], index: 5, kind: output, shape index: {}]  }
   0x1   :  { %v276_v0 = vld [vmem:[%s395_s1] sm:$0xff]   ;;  %245 = vmatprep.subr.bf16.mxu0 %v310_v1  ;;  %v277_v2 = vld [vmem:[%s395_s1 + $0x8] sm:$0xff]   ;;  %253 = vmatprep.subr.bf16.mxu1 %v310_v1  ;;  %v280_v7 = vld [vmem:[%s397_s3 + $0x10] sm:$0xff]  }
   0x2   :  { %246 = vmatpush3.bf16.msra.mxu0 %v276_v0  ;;  %249 = vmatprep.mubr.msk.bf16.mxu0 %vm311_vm0, %v310_v1  ;;  %v22_v3 = vld [vmem:[%s394_s0] sm:$0xff]  ;;  %v279_v6 = vld [vmem:[%s397_s3 + $0x8] sm:$0xff]  }
   0x3   :  { %247 = vmatprep.subr.bf16.mxu0 %v310_v1  ;;  %v278_v4 = vld [vmem:[%s397_s3] sm:$0xff]   ;;  %269 = vmatprep.mubr.msk.bf16.mxu1 %vm311_vm0, %v310_v1  ;;  %v23_v5 = vpack.c.bf16 %v22_v3, %v22_v3 }
   0x4   :  { %254 = vmatpush3.bf16.msra.mxu1 %v278_v4 }
   0x5   :  { %255 = vmatprep.subr.bf16.mxu1 %v310_v1 }
   0x6   :  { %248 = vmatpush3.bf16.msra.mxu0 %v277_v2 }
   0x8   :  { %256 = vmatpush3.bf16.msra.mxu1 %v279_v6 }
   0x9   :  { %250 = vmatmul.mubr.msk.bf16.vlgmr.msra.gmra.mrb[0].mxu0 %vm47_vm1, %v23_v5  ;;  %257 = vmatprep.subr.bf16.mxu1 %v310_v1 }
   0xa   :  { %10 = vsyncpa [#allocation3], 0  ;;  %v281_v8 = vld [vmem:[%s397_s3 + $0x18] sm:$0xff]   ;;  %v282_v9 = vld [vmem:[%s397_s3 + $0x20] sm:$0xff]   ;;  %s312_s17 = smov [#allocation2]   ;;  %vm204_vm2 = vcmask 130048  }
   0xb   :  { %v283_v10 = vld [vmem:[%s397_s3 + $0x28] sm:$0xff]   ;;  %v284_v11 = vld [vmem:[%s397_s3 + $0x30] sm:$0xff]   ;;  %v285_v12 = vld [vmem:[%s397_s3 + $0x38] sm:$0xff]   ;;  %s212_s18 = sshll.u32 %s312_s17, 4  ;;  %s213_s18 = int_to_ptr.vmem [resolvable:$true] %s212_s18 }
   0xc   :  { %258 = vmatpush3.bf16.msra.mxu1 %v280_v7  ;;  %v220_v13 = vld [vmem:[%s396_s2] ss:$0 sm:$0xff]  ;;  %s286_s2 = scalar_lea.vmem %s213_s18, 128  ;;  %p291_p1 = scmp.lt.s32.totalorder %s213_s18, %s213_s18 }
   0xd   :  { %259 = vmatprep.subr.bf16.mxu1 %v310_v1  ;;  %v224_v21 = vld [vmem:[%s398_s4] ss:$0 sm:$0xff]  ;;  %p287_p0 = scmp.ne.s32.totalorder %s213_s18, %s286_s2  ;;  %p292_p2 = scmp.lt.s32.totalorder %s286_s2, %s286_s2 }
   0xf   :  { %p293_p3 = por %p292_p2, %p291_p1 }
  0x10   :  { %260 = vmatpush3.bf16.msra.mxu1 %v281_v8 }
  0x11   :  { %261 = vmatprep.subr.bf16.mxu1 %v310_v1  ;;  %p294_p4 = pnand %p293_p3, %p287_p0 }
  0x14   :  { %262 = vmatpush3.bf16.msra.mxu1 %v282_v9 }
  0x15   :  { %263 = vmatprep.subr.bf16.mxu1 %v310_v1 }
  0x18   :  { %264 = vmatpush3.bf16.msra.mxu1 %v283_v10 }
  0x19   :  { %265 = vmatprep.subr.bf16.mxu1 %v310_v1 }
  0x1c   :  { %266 = vmatpush3.bf16.msra.mxu1 %v284_v11 }
  0x1d   :  { %267 = vmatprep.subr.bf16.mxu1 %v310_v1 }
  0x20   :  { %268 = vmatpush3.bf16.msra.mxu1 %v285_v12 }
  0xdc   :  { %v85_v14 = vpop.f32.mrb[0].mxu0 }
  0xdd   :  { %v86_v15 = vadd.f32 %v220_v13, %v85_v14  ;;  %v251_v16 = vpop.f32.mrb[1].mxu0 }
  0xde   :  { %v88_v17 = vpop.f32.mrb[2].mxu0 }
  0xdf   :  { %v91_v18 = vmax.f32 %v86_v15, 0.0  ;;  %v252_v19 = vpop.f32.mrb[3].mxu0 }
  0xe1   :  { %v92_v20 = vpack.c.bf16 %v91_v18, %v91_v18 }
  0xe3   :  { %270 = vmatmul.mubr.bf16.vlgmr.msra.gmra.mrb[0].mxu1 %v92_v20 }
 0x1b6   :  { %v198_v22 = vpop.f32.mrb[0].mxu1 }
 0x1b7   :  { %v199_v23 = vadd.f32 %v224_v21, %v198_v22  ;;  %v271_v24 = vpop.f32.mrb[1].mxu1 }
 0x1b8   :  { %v201_v25 = vpop.f32.mrb[2].mxu1 }
 0x1b9   :  { %v272_v26 = vpop.f32.mrb[3].mxu1  ;;  %205 = vst.msk [vmem:[#allocation2] sm:$0xff] %vm204_vm2, %v199_v23 }
 0x1ba   :  { %297 = shalt.err (!%p294_p4)
}
 0x1bb   :  { %s298_s4 = scalar_lea.hbm %s399_s5, 128 }
 0x1bc   :  { %p299_p5 = scmp.ne.s32.totalorder %s399_s5, %s298_s4  ;;  %p302_p6 = scmp.lt.u32.totalorder %s298_s4, %s399_s5 }
 0x1be   :  { %p304_p7 = pnand %p302_p6, %p299_p5 }
 0x1c0   :  { %307 = shalt.err (!%p304_p7)
}
 0x1c1   :  { %215 = dma.vmem_to_hbm [thread:$0]  %s213_s18, 128, %s399_s5, [#allocation3]  }
 0x1c2   :  { %308 = dma.done.wait [#allocation3], 128  }
 0x1c3   :  { %309 = vsyncadd [#allocation3], 4294967168 }
 0x1c4   :  { %219 = vsyncpa [#allocation3], 1 }

// kernel: tpu_custom_call.1
= control target key start
LH: loop header
LB: loop body
LE: loop exit
PB: predicated region body
PF: predicated region fallthrough
CT: control target
= control target key end

     0   :  { %v310_v1 = vmov 0.0   ;;  %vm311_vm0 = vmmov 0   ;;  %vm47_vm1 = vcmask 261120   ;;  %s394_s0 = inlined_call_operand.vmem [shape: f32[8,32], index: 0, kind: input, shape index: {}]   ;;  %s395_s1 = inlined_call_operand.vmem [shape: bf16[32,128], index: 1, kind: input, shape index: {}]   ;;  %s396_s2 = inlined_call_operand.vmem [shape: f32[1,128], index: 2, kind: input, shape index: {}]   ;;  %s397_s3 = inlined_call_operand.vmem [shape: bf16[128,16], index: 3, kind: input, shape index: {}]   ;;  %s398_s4 = inlined_call_operand.vmem [shape: f32[1,16], index: 4, kind: input, shape index: {}]   ;;  %s399_s5 = inlined_call_operand.hbm [shape: f32[8,16], index: 5, kind: output, shape index: {}]  }
   0x1   :  { %v276_v0 = vld [vmem:[%s395_s1] sm:$0xff]   ;;  %245 = vmatprep.subr.bf16.mxu0 %v310_v1  ;;  %v277_v2 = vld [vmem:[%s395_s1 + $0x8] sm:$0xff]   ;;  %253 = vmatprep.subr.bf16.mxu1 %v310_v1  ;;  %v280_v7 = vld [vmem:[%s397_s3 + $0x10] sm:$0xff]  }
   0x2   :  { %246 = vmatpush3.bf16.msra.mxu0 %v276_v0  ;;  %249 = vmatprep.mubr.msk.bf16.mxu0 %vm311_vm0, %v310_v1  ;;  %v22_v3 = vld [vmem:[%s394_s0] sm:$0xff]  ;;  %v279_v6 = vld [vmem:[%s397_s3 + $0x8] sm:$0xff]  }
   0x3   :  { %247 = vmatprep.subr.bf16.mxu0 %v310_v1  ;;  %v278_v4 = vld [vmem:[%s397_s3] sm:$0xff]   ;;  %269 = vmatprep.mubr.msk.bf16.mxu1 %vm311_vm0, %v310_v1  ;;  %v23_v5 = vpack.c.bf16 %v22_v3, %v22_v3 }
   0x4   :  { %254 = vmatpush3.bf16.msra.mxu1 %v278_v4 }
   0x5   :  { %255 = vmatprep.subr.bf16.mxu1 %v310_v1 }
   0x6   :  { %248 = vmatpush3.bf16.msra.mxu0 %v277_v2 }
   0x8   :  { %256 = vmatpush3.bf16.msra.mxu1 %v279_v6 }
   0x9   :  { %250 = vmatmul.mubr.msk.bf16.vlgmr.msra.gmra.mrb[0].mxu0 %vm47_vm1, %v23_v5  ;;  %257 = vmatprep.subr.bf16.mxu1 %v310_v1 }
   0xa   :  { %10 = vsyncpa [#allocation3], 0  ;;  %v281_v8 = vld [vmem:[%s397_s3 + $0x18] sm:$0xff]   ;;  %v282_v9 = vld [vmem:[%s397_s3 + $0x20] sm:$0xff]   ;;  %s312_s17 = smov [#allocation2]   ;;  %vm204_vm2 = vcmask 130048  }
   0xb   :  { %v283_v10 = vld [vmem:[%s397_s3 + $0x28] sm:$0xff]   ;;  %v284_v11 = vld [vmem:[%s397_s3 + $0x30] sm:$0xff]   ;;  %v285_v12 = vld [vmem:[%s397_s3 + $0x38] sm:$0xff]   ;;  %s212_s18 = sshll.u32 %s312_s17, 4  ;;  %s213_s18 = int_to_ptr.vmem [resolvable:$true] %s212_s18 }
   0xc   :  { %258 = vmatpush3.bf16.msra.mxu1 %v280_v7  ;;  %v220_v13 = vld [vmem:[%s396_s2] ss:$0 sm:$0xff]  ;;  %s286_s2 = scalar_lea.vmem %s213_s18, 128  ;;  %p291_p1 = scmp.lt.s32.totalorder %s213_s18, %s213_s18 }
   0xd   :  { %259 = vmatprep.subr.bf16.mxu1 %v310_v1  ;;  %v224_v21 = vld [vmem:[%s398_s4] ss:$0 sm:$0xff]  ;;  %p287_p0 = scmp.ne.s32.totalorder %s213_s18, %s286_s2  ;;  %p292_p2 = scmp.lt.s32.totalorder %s286_s2, %s286_s2 }
   0xf   :  { %p293_p3 = por %p292_p2, %p291_p1 }
  0x10   :  { %260 = vmatpush3.bf16.msra.mxu1 %v281_v8 }
  0x11   :  { %261 = vmatprep.subr.bf16.mxu1 %v310_v1  ;;  %p294_p4 = pnand %p293_p3, %p287_p0 }
  0x14   :  { %262 = vmatpush3.bf16.msra.mxu1 %v282_v9 }
  0x15   :  { %263 = vmatprep.subr.bf16.mxu1 %v310_v1 }
  0x18   :  { %264 = vmatpush3.bf16.msra.mxu1 %v283_v10 }
  0x19   :  { %265 = vmatprep.subr.bf16.mxu1 %v310_v1 }
  0x1c   :  { %266 = vmatpush3.bf16.msra.mxu1 %v284_v11 }
  0x1d   :  { %267 = vmatprep.subr.bf16.mxu1 %v310_v1 }
  0x20   :  { %268 = vmatpush3.bf16.msra.mxu1 %v285_v12 }
  0xdc   :  { %v85_v14 = vpop.f32.mrb[0].mxu0 }
  0xdd   :  { %v86_v15 = vadd.f32 %v220_v13, %v85_v14  ;;  %v251_v16 = vpop.f32.mrb[1].mxu0 }
  0xde   :  { %v88_v17 = vpop.f32.mrb[2].mxu0 }
  0xdf   :  { %v91_v18 = vmax.f32 %v86_v15, 0.0  ;;  %v252_v19 = vpop.f32.mrb[3].mxu0 }
  0xe1   :  { %v92_v20 = vpack.c.bf16 %v91_v18, %v91_v18 }
  0xe3   :  { %270 = vmatmul.mubr.bf16.vlgmr.msra.gmra.mrb[0].mxu1 %v92_v20 }
 0x1b6   :  { %v198_v22 = vpop.f32.mrb[0].mxu1 }
 0x1b7   :  { %v199_v23 = vadd.f32 %v224_v21, %v198_v22  ;;  %v271_v24 = vpop.f32.mrb[1].mxu1 }
 0x1b8   :  { %v201_v25 = vpop.f32.mrb[2].mxu1 }
 0x1b9   :  { %v272_v26 = vpop.f32.mrb[3].mxu1  ;;  %205 = vst.msk [vmem:[#allocation2] sm:$0xff] %vm204_vm2, %v199_v23 }
 0x1ba   :  { %297 = shalt.err (!%p294_p4)
}
 0x1bb   :  { %s298_s4 = scalar_lea.hbm %s399_s5, 128 }
 0x1bc   :  { %p299_p5 = scmp.ne.s32.totalorder %s399_s5, %s298_s4  ;;  %p302_p6 = scmp.lt.u32.totalorder %s298_s4, %s399_s5 }
 0x1be   :  { %p304_p7 = pnand %p302_p6, %p299_p5 }
 0x1c0   :  { %307 = shalt.err (!%p304_p7)
}
 0x1c1   :  { %215 = dma.vmem_to_hbm [thread:$0]  %s213_s18, 128, %s399_s5, [#allocation3]  }
 0x1c2   :  { %308 = dma.done.wait [#allocation3], 128  }
 0x1c3   :  { %309 = vsyncadd [#allocation3], 4294967168 }
 0x1c4   :  { %219 = vsyncpa [#allocation3], 1 }

</bundles_post_ra>
